<compile_context>
chip_gen: v6e
topology: v6e:2x2x1
jax: 0.10.0
libtpu: 0.0.40
codegen_flags: <defaults>
</compile_context>

<pallas_src>
import functools

import jax
import jax.numpy as jnp
from jax.experimental import pallas as pl
from jax.experimental.pallas import tpu as pltpu


def _round_up(x, m):
    return (x + m - 1) // m * m


def _vq_kernel(z_ref, cbt_ref, cb_ref, cbsq_ref, zq_ref, idx_ref):
    z = z_ref[...]            # (tn, D) f32
    cbt = cbt_ref[...]        # (D, K)  f32  (pre-transposed codebook)
    cb = cb_ref[...]          # (K, D)  f32  (codebook rows, for the gather)
    cb_sq = cbsq_ref[...]     # (1, K)  f32  (precomputed ||c_k||^2)

    # argmin_k ||z - c_k||^2 == argmin_k (||c_k||^2 - 2 z.c_k)
    cross = jnp.dot(z, cbt, preferred_element_type=jnp.float32)    # (tn, K) MXU
    score = cb_sq - 2.0 * cross                                    # (tn, K)

    k = score.shape[1]
    min_s = jnp.min(score, axis=-1, keepdims=True)                 # (tn, 1)
    k_iota = jax.lax.broadcasted_iota(jnp.int32, score.shape, 1)   # (tn, K)
    # First-occurrence argmin (matches torch.argmin tie-break).
    idx_col = jnp.min(jnp.where(score <= min_s, k_iota, k),
                      axis=-1, keepdims=True)                      # (tn, 1) int32

    # Gather codebook rows via one-hot matmul (MXU).
    onehot = (k_iota == idx_col).astype(cb.dtype)                  # (tn, K)
    z_q = jnp.dot(onehot, cb, preferred_element_type=jnp.float32)  # (tn, D) MXU
    zq_ref[...] = z_q.astype(zq_ref.dtype)

    # Lane-dense index row: (1, K) iota contracted with onehot over K on the
    # MXU gives (1, tn) directly — no relayout, no masked (.,1) stores.
    iota_row = jax.lax.broadcasted_iota(jnp.int32, (1, k), 1).astype(jnp.float32)
    idx_row = jax.lax.dot_general(
        iota_row, onehot,
        dimension_numbers=(((1,), (1,)), ((), ())),
        preferred_element_type=jnp.float32)                        # (1, tn)
    idx_ref[...] = idx_row.astype(jnp.int32)


@functools.partial(jax.jit, static_argnames=("block_n",))
def vector_quantize(z_e, codebook, *, block_n=None):
    """z_e: (N, D) f32, codebook: (K, D) f32 -> (z_q (N, D), inds (N,) int32)."""
    n, d = z_e.shape
    k, d2 = codebook.shape
    assert d == d2

    if block_n is None:
        # 128-aligned row tile; sweep 256-1024 on v6e/v7x, 128-512 on v5e.
        block_n = min(512, _round_up(n, 128))
    block_n = _round_up(block_n, 128)
    n_pad = _round_up(n, block_n)

    z_in = z_e if n_pad == n else jnp.pad(z_e, ((0, n_pad - n), (0, 0)))

    # Hoisted, grid-invariant codebook-side precompute (once per call).
    cb_t = codebook.T                                          # (D, K)
    cb_sq = jnp.sum(codebook * codebook, axis=1)[None, :]      # (1, K)

    grid = (n_pad // block_n,)
    z_q, idx = pl.pallas_call(
        _vq_kernel,
        out_shape=(
            jax.ShapeDtypeStruct((n_pad, d), z_e.dtype),
            jax.ShapeDtypeStruct((n_pad // block_n, block_n), jnp.int32),
        ),
        grid_spec=pltpu.PrefetchScalarGridSpec(
            num_scalar_prefetch=0,
            grid=grid,
            in_specs=[
                pl.BlockSpec((block_n, d), lambda i: (i, 0)),   # z_e row tile
                pl.BlockSpec((d, k), lambda i: (0, 0)),         # codebook^T (resident)
                pl.BlockSpec((k, d), lambda i: (0, 0)),         # codebook   (resident)
                pl.BlockSpec((1, k), lambda i: (0, 0)),         # ||c||^2    (resident)
            ],
            out_specs=[
                pl.BlockSpec((block_n, d), lambda i: (i, 0)),   # z_q row tile
                pl.BlockSpec((1, block_n), lambda i: (i, 0)),   # lane-dense indices
            ],
        ),
        compiler_params=pltpu.CompilerParams(
            dimension_semantics=("parallel",)),
    )(z_in, cb_t, codebook, cb_sq)

    inds = idx.reshape(n_pad)[:n]
    return z_q[:n], inds


def init_codebook(key, K, D):
    # Matches nn.Embedding(K, D).weight.data.uniform_(-1/K, 1/K)
    return jax.random.uniform(key, (K, D), dtype=jnp.float32,
                              minval=-1.0 / K, maxval=1.0 / K)


if __name__ == "__main__":
    K, D, N = 16, 32, 50   # small, module-consistent shapes (N exercises padding)
    key = jax.random.PRNGKey(0)
    k_cb, k_z = jax.random.split(key)

    codebook = init_codebook(k_cb, K, D)
    z_e = jax.random.normal(k_z, (N, D), dtype=jnp.float32)

    z_q, inds = vector_quantize(z_e, codebook)
    jax.block_until_ready((z_q, inds))

    # Cross-check against a plain-JAX reference of the torch forward.
    ref_dist = jnp.sqrt(jnp.sum((z_e[:, None, :] - codebook[None, :, :]) ** 2, -1))
    ref_inds = jnp.argmin(ref_dist, axis=1)
    ref_zq = codebook[ref_inds]
    assert inds.shape == (N,)
    assert z_q.shape == (N, D)
    assert jnp.array_equal(inds, ref_inds.astype(jnp.int32))
    assert jnp.allclose(z_q, ref_zq, atol=1e-5)

    print("KERNEL_OK")
</pallas_src>

<mosaic_0001>
module attributes {stable_mosaic.version = 11 : i64} {
  func.func @_vq_kernel(%arg0: i32, %arg1: memref<128x32xf32, #tpu.memory_space<vmem>>, %arg2: memref<32x16xf32, #tpu.memory_space<vmem>>, %arg3: memref<16x32xf32, #tpu.memory_space<vmem>>, %arg4: memref<1x16xf32, #tpu.memory_space<vmem>>, %arg5: memref<128x32xf32, #tpu.memory_space<vmem>>, %arg6: memref<1x128xi32, #tpu.memory_space<vmem>>) attributes {dimension_semantics = [#tpu.dimension_semantics<parallel>], iteration_bounds = array<i64: 1>, scalar_prefetch = 0 : i64, scratch_operands = 0 : i64, tpu.core_type = #tpu.core_type<tc>, window_params = [{transform_indices = @transform_0, window_bounds = array<i64: 128, 32>}, {pipeline_mode = #tpu.pipeline_mode<synchronous>, transform_indices = @transform_1, window_bounds = array<i64: 32, 16>}, {pipeline_mode = #tpu.pipeline_mode<synchronous>, transform_indices = @transform_2, window_bounds = array<i64: 16, 32>}, {pipeline_mode = #tpu.pipeline_mode<synchronous>, transform_indices = @transform_3, window_bounds = array<i64: 1, 16>}, {transform_indices = @transform_4, window_bounds = array<i64: 128, 32>}, {transform_indices = @transform_5, window_bounds = array<i64: 1, 128>}]} {
    %c0 = arith.constant 0 : index
    %c0_0 = arith.constant 0 : index
    %0 = vector.load %arg1[%c0, %c0_0] : memref<128x32xf32, #tpu.memory_space<vmem>>, vector<128x32xf32>
    %c0_1 = arith.constant 0 : index
    %c0_2 = arith.constant 0 : index
    %1 = vector.load %arg2[%c0_1, %c0_2] : memref<32x16xf32, #tpu.memory_space<vmem>>, vector<32x16xf32>
    %c0_3 = arith.constant 0 : index
    %c0_4 = arith.constant 0 : index
    %2 = vector.load %arg3[%c0_3, %c0_4] : memref<16x32xf32, #tpu.memory_space<vmem>>, vector<16x32xf32>
    %c0_5 = arith.constant 0 : index
    %c0_6 = arith.constant 0 : index
    %3 = vector.load %arg4[%c0_5, %c0_6] : memref<1x16xf32, #tpu.memory_space<vmem>>, vector<1x16xf32>
    %cst = arith.constant dense<0.000000e+00> : vector<128x16xf32>
    %4 = tpu.matmul %0, %1, %cst {dimension_numbers = #tpu.dot_dimension_numbers<[1], [0], [0], [1], [0, 0, 1, 1], [], []>} : vector<128x32xf32>, vector<32x16xf32>, vector<128x16xf32> -> vector<128x16xf32>
    %cst_7 = arith.constant 2.000000e+00 : f32
    %5 = vector.broadcast %cst_7 : f32 to vector<128x16xf32>
    %6 = arith.mulf %5, %4 : vector<128x16xf32>
    %7 = vector.broadcast %3 : vector<1x16xf32> to vector<128x16xf32>
    %8 = arith.subf %7, %6 : vector<128x16xf32>
    %cst_8 = arith.constant dense<0x7F800000> : vector<128xf32>
    %9 = vector.multi_reduction <minimumf>, %8, %cst_8 [1] : vector<128x16xf32> to vector<128xf32>
    %10 = vector.shape_cast %9 : vector<128xf32> to vector<128x1xf32>
    %11 = tpu.iota {dimensions = array<i32: 1>} : vector<128x16xi32>
    %12 = vector.broadcast %10 : vector<128x1xf32> to vector<128x16xf32>
    %13 = arith.cmpf ole, %8, %12 : vector<128x16xf32>
    %c16_i32 = arith.constant 16 : i32
    %14 = vector.broadcast %c16_i32 : i32 to vector<128x16xi32>
    %15 = arith.select %13, %11, %14 : vector<128x16xi1>, vector<128x16xi32>
    %cst_9 = arith.constant dense<2147483647> : vector<128xi32>
    %16 = vector.multi_reduction <minsi>, %15, %cst_9 [1] : vector<128x16xi32> to vector<128xi32>
    %17 = vector.shape_cast %16 : vector<128xi32> to vector<128x1xi32>
    %18 = vector.broadcast %17 : vector<128x1xi32> to vector<128x16xi32>
    %19 = arith.cmpi eq, %11, %18 : vector<128x16xi32>
    %20 = arith.extui %19 : vector<128x16xi1> to vector<128x16xi32>
    %21 = arith.sitofp %20 : vector<128x16xi32> to vector<128x16xf32>
    %cst_10 = arith.constant dense<0.000000e+00> : vector<128x32xf32>
    %22 = tpu.matmul %21, %2, %cst_10 {dimension_numbers = #tpu.dot_dimension_numbers<[1], [0], [0], [1], [0, 0, 1, 1], [], []>} : vector<128x16xf32>, vector<16x32xf32>, vector<128x32xf32> -> vector<128x32xf32>
    %c0_11 = arith.constant 0 : index
    %c0_12 = arith.constant 0 : index
    %23 = vector.load %arg5[%c0_11, %c0_12] : memref<128x32xf32, #tpu.memory_space<vmem>>, vector<128x32xf32>
    tpu.vector_store %arg5[%c0_11, %c0_12], %22 {strides = array<i32>} : memref<128x32xf32, #tpu.memory_space<vmem>>, vector<128x32xf32>,
    %24 = tpu.iota {dimensions = array<i32: 1>} : vector<1x16xi32>
    %25 = arith.sitofp %24 : vector<1x16xi32> to vector<1x16xf32>
    %cst_13 = arith.constant dense<0.000000e+00> : vector<1x128xf32>
    %26 = tpu.matmul %25, %21, %cst_13 {dimension_numbers = #tpu.dot_dimension_numbers<[1], [1], [0], [0], [0, 0, 1, 0], [], []>} : vector<1x16xf32>, vector<128x16xf32>, vector<1x128xf32> -> vector<1x128xf32>
    %27 = arith.fptosi %26 : vector<1x128xf32> to vector<1x128xi32>
    %c0_14 = arith.constant 0 : index
    %c0_15 = arith.constant 0 : index
    %28 = vector.load %arg6[%c0_14, %c0_15] : memref<1x128xi32, #tpu.memory_space<vmem>>, vector<1x128xi32>
    tpu.vector_store %arg6[%c0_14, %c0_15], %27 {strides = array<i32>} : memref<1x128xi32, #tpu.memory_space<vmem>>, vector<1x128xi32>,
    return
  }
  func.func @transform_0(%arg0: i32) -> (i32, i32) {
    %c0_i32 = arith.constant 0 : i32
    %c0_i32_0 = arith.constant 0 : i32
    return %arg0, %c0_i32 : i32, i32
  }
  func.func @transform_1(%arg0: i32) -> (i32, i32) {
    %c0_i32 = arith.constant 0 : i32
    %c0_i32_0 = arith.constant 0 : i32
    %c0_i32_1 = arith.constant 0 : i32
    return %c0_i32, %c0_i32_0 : i32, i32
  }
  func.func @transform_2(%arg0: i32) -> (i32, i32) {
    %c0_i32 = arith.constant 0 : i32
    %c0_i32_0 = arith.constant 0 : i32
    %c0_i32_1 = arith.constant 0 : i32
    return %c0_i32, %c0_i32_0 : i32, i32
  }
  func.func @transform_3(%arg0: i32) -> (i32, i32) {
    %c0_i32 = arith.constant 0 : i32
    %c0_i32_0 = arith.constant 0 : i32
    %c0_i32_1 = arith.constant 0 : i32
    return %c0_i32, %c0_i32_0 : i32, i32
  }
  func.func @transform_4(%arg0: i32) -> (i32, i32) {
    %c0_i32 = arith.constant 0 : i32
    %c0_i32_0 = arith.constant 0 : i32
    return %arg0, %c0_i32 : i32, i32
  }
  func.func @transform_5(%arg0: i32) -> (i32, i32) {
    %c0_i32 = arith.constant 0 : i32
    %c0_i32_0 = arith.constant 0 : i32
    return %arg0, %c0_i32 : i32, i32
  }
}

</mosaic_0001>

<bundles_post_ra>
// kernel: vector_quantize.1
= control target key start
LH: loop header
LB: loop body
LE: loop exit
PB: predicated region body
PF: predicated region fallthrough
CT: control target
= control target key end

     0   :  { %vm42_vm0 = vcmask 261120   ;;  %vm274_vm1 = vcmask 130048   ;;  %s1777_s1 = inlined_call_operand.vmem [shape: f32[32,16], index: 1, kind: input, shape index: {}]   ;;  %s1778_s0 = inlined_call_operand.vmem [shape: f32[128,32], index: 0, kind: input, shape index: {}]   ;;  %s1779_s3 = inlined_call_operand.vmem [shape: f32[1,16], index: 3, kind: input, shape index: {}]   ;;  %s1780_s2 = inlined_call_operand.vmem [shape: f32[16,32], index: 2, kind: input, shape index: {}]   ;;  %s1781_s4 = inlined_call_operand.vmem [shape: f32[128,32], index: 4, kind: output, shape index: {0}]   ;;  %s1782_s5 = inlined_call_operand.vmem [shape: s32[1,128], index: 5, kind: output, shape index: {1}]  }
   0x1   :  { %v38_v0 = vld [vmem:[%s1777_s1 + $0x18] sm:$0xff]  ;;  %v37_v1 = vld [vmem:[%s1777_s1 + $0x10] sm:$0xff]  ;;  %v19_v2 = vld [vmem:[%s1778_s0] sm:$0xff] }
   0x2   :  { %1059 = vmatprep.subr.mxu0 %v38_v0  ;;  %v36_v3 = vld [vmem:[%s1777_s1 + $0x8] sm:$0xff]  ;;  %1067 = vmatprep.mubr.msk.f32.mxu0 %vm42_vm0, %v19_v2  ;;  %v35_v4 = vld [vmem:[%s1777_s1] sm:$0xff]  ;;  %v21_v6 = vld [vmem:[%s1778_s0 + $0x10] sm:$0xff] }
   0x3   :  { %1060 = vmatpush3.msra.mxu0 %v38_v0  ;;  %v20_v5 = vld [vmem:[%s1778_s0 + $0x8] sm:$0xff]  ;;  %v22_v7 = vld [vmem:[%s1778_s0 + $0x18] sm:$0xff]  ;;  %v23_v8 = vld [vmem:[%s1778_s0 + $0x20] sm:$0xff] }
   0x4   :  { %1061 = vmatprep.subr.mxu0 %v37_v1  ;;  %v24_v9 = vld [vmem:[%s1778_s0 + $0x28] sm:$0xff]  ;;  %v25_v10 = vld [vmem:[%s1778_s0 + $0x30] sm:$0xff]  ;;  %v26_v11 = vld [vmem:[%s1778_s0 + $0x38] sm:$0xff] }
   0x5   :  { %1062 = vmatpush3.msra.mxu0 %v37_v1  ;;  %v27_v12 = vld [vmem:[%s1778_s0 + $0x40] sm:$0xff]  ;;  %v28_v13 = vld [vmem:[%s1778_s0 + $0x48] sm:$0xff]  ;;  %v29_v14 = vld [vmem:[%s1778_s0 + $0x50] sm:$0xff] }
   0x6   :  { %1063 = vmatprep.subr.mxu0 %v36_v3  ;;  %v30_v15 = vld [vmem:[%s1778_s0 + $0x58] sm:$0xff]  ;;  %v31_v16 = vld [vmem:[%s1778_s0 + $0x60] sm:$0xff]  ;;  %v32_v17 = vld [vmem:[%s1778_s0 + $0x68] sm:$0xff] }
   0x7   :  { %1064 = vmatpush3.msra.mxu0 %v36_v3  ;;  %v33_v18 = vld [vmem:[%s1778_s0 + $0x70] sm:$0xff]  ;;  %v34_v19 = vld [vmem:[%s1778_s0 + $0x78] sm:$0xff]  ;;  %v1269_v25 = vld [vmem:[%s1779_s3] ss:$0 sm:$0xff] }
   0x8   :  { %1065 = vmatprep.subr.mxu0 %v35_v4 }
   0x9   :  { %1066 = vmatpush3.msra.mxu0 %v35_v4 }
   0xa   :  { %1068 = vmatmul.mubr.msk.f32.vlgmr.msra.gmra.mxu0 %vm42_vm0, %v20_v5 }
   0xb   :  { %1070 = vmatprep.mubr.msk.f32.mxu0 %vm42_vm0, %v21_v6 }
   0xe   :  { %1071 = vmatmul.mubr.msk.f32.gmra.mxu0 %vm42_vm0, %v22_v7 }
   0xf   :  { %1073 = vmatprep.mubr.msk.f32.mxu0 %vm42_vm0, %v23_v8 }
  0x12   :  { %1074 = vmatmul.mubr.msk.f32.gmra.mxu0 %vm42_vm0, %v24_v9 }
  0x13   :  { %1076 = vmatprep.mubr.msk.f32.mxu0 %vm42_vm0, %v25_v10 }
  0x16   :  { %1077 = vmatmul.mubr.msk.f32.gmra.mxu0 %vm42_vm0, %v26_v11 }
  0x17   :  { %1079 = vmatprep.mubr.msk.f32.mxu0 %vm42_vm0, %v27_v12 }
  0x1a   :  { %1080 = vmatmul.mubr.msk.f32.gmra.mxu0 %vm42_vm0, %v28_v13 }
  0x1b   :  { %1082 = vmatprep.mubr.msk.f32.mxu0 %vm42_vm0, %v29_v14 }
  0x1e   :  { %1083 = vmatmul.mubr.msk.f32.gmra.mxu0 %vm42_vm0, %v30_v15 }
  0x1f   :  { %1085 = vmatprep.mubr.msk.f32.mxu0 %vm42_vm0, %v31_v16 }
  0x22   :  { %1086 = vmatmul.mubr.msk.f32.gmra.mxu0 %vm42_vm0, %v32_v17 }
  0x23   :  { %1088 = vmatprep.mubr.msk.f32.mxu0 %vm42_vm0, %v33_v18 }
  0x26   :  { %1089 = vmatmul.mubr.msk.f32.gmra.mxu0 %vm42_vm0, %v34_v19 }
  0xca   :  { %v1069_v20 = vpop.f32.mrf.mxu0 }
  0xcb   :  { %v237_v22 = vmul.f32 2.0, %v1069_v20 }
  0xcc   :  { %v157_v21 = vpop.f32.mrf.mxu0 }
  0xcd   :  { %v236_v23 = vmul.f32 2.0, %v157_v21  ;;  %v1277_v29 = vsub.f32 %v1269_v25, %v237_v22  ;;  %v323_v21 = vlaneseq }
  0xce   :  { %v1072_v24 = vpop.f32.mrf.mxu0 }
  0xcf   :  { %v1272_v26 = vsub.f32 %v1269_v25, %v236_v23  ;;  %v278_v32 = vsel %vm274_vm1, %v1277_v29, inf  ;;  %v239_v58 = vmul.f32 2.0, %v1072_v24  ;;  %v1351_v22 = vand.u32 127, %v323_v21 }
  0xd0   :  { %v167_v27 = vpop.f32.mrf.mxu0 }
  0xd1   :  { %v275_v28 = vsel %vm274_vm1, %v1272_v26, inf  ;;  %v1313_v1 = vsub.f32 %v1269_v25, %v239_v58  ;;  %v238_v6 = vmul.f32 2.0, %v167_v27 }
  0xd2   :  { %276 = vmin.xlane.f32.xlu0 %v275_v28  ;;  %v1075_v30 = vpop.f32.mrf.mxu0 }
  0xd3   :  { %v284_v7 = vsel %vm274_vm1, %v1313_v1, inf  ;;  %v1337_v14 = vsub.f32 %v1269_v25, %v238_v6  ;;  %v241_v15 = vmul.f32 2.0, %v1075_v30 }
  0xd4   :  { %v177_v31 = vpop.f32.mrf.mxu0 }
  0xd5   :  { %v240_v0 = vmul.f32 2.0, %v177_v31  ;;  %v281_v16 = vsel %vm274_vm1, %v1337_v14, inf  ;;  %v1347_v19 = vsub.f32 %v1269_v25, %v241_v15 }
  0xd6   :  { %279 = vmin.xlane.f32.xlu0 %v278_v32  ;;  %v1078_v33 = vpop.f32.mrf.mxu0 }
  0xd7   :  { %v243_v52 = vmul.f32 2.0, %v1078_v33  ;;  %v1327_v9 = vsub.f32 %v1269_v25, %v240_v0  ;;  %v290_v20 = vsel %vm274_vm1, %v1347_v19, inf }
  0xd8   :  { %v187_v34 = vpop.f32.mrf.mxu0 }
  0xd9   :  { %v1303_v59 = vsub.f32 %v1269_v25, %v243_v52  ;;  %v242_v11 = vmul.f32 2.0, %v187_v34  ;;  %v287_v12 = vsel %vm274_vm1, %v1327_v9, inf }
  0xda   :  { %v1081_v35 = vpop.f32.mrf.mxu0 }
  0xdb   :  { %v245_v44 = vmul.f32 2.0, %v1081_v35  ;;  %v296_v3 = vsel %vm274_vm1, %v1303_v59, inf  ;;  %v1342_v17 = vsub.f32 %v1269_v25, %v242_v11 }
  0xdc   :  { %v197_v36 = vpop.f32.mrf.mxu0 }
  0xdd   :  { %v1293_v53 = vsub.f32 %v1269_v25, %v245_v44  ;;  %v244_v2 = vmul.f32 2.0, %v197_v36  ;;  %v293_v18 = vsel %vm274_vm1, %v1342_v17, inf }
  0xde   :  { %v1084_v37 = vpop.f32.mrf.mxu0 }
  0xdf   :  { %v247_v40 = vmul.f32 2.0, %v1084_v37  ;;  %v302_v61 = vsel %vm274_vm1, %v1293_v53, inf  ;;  %v1330_v10 = vsub.f32 %v1269_v25, %v244_v2 }
  0xe0   :  { %v207_v38 = vpop.f32.mrf.mxu0 }
  0xe1   :  { %v1287_v48 = vsub.f32 %v1269_v25, %v247_v40  ;;  %v246_v60 = vmul.f32 2.0, %v207_v38  ;;  %v299_v13 = vsel %vm274_vm1, %v1330_v10, inf }
  0xe2   :  { %v1087_v39 = vpop.f32.mrf.mxu0 }
  0xe3   :  { %v249_v41 = vmul.f32 2.0, %v1087_v39  ;;  %v308_v56 = vsel %vm274_vm1, %v1287_v48, inf  ;;  %v1320_v5 = vsub.f32 %v1269_v25, %v246_v60 }
  0xe4   :  { %v217_v42 = vpop.f32.mrf.mxu0 }
  0xe5   :  { %v1282_v43 = vsub.f32 %v1269_v25, %v249_v41  ;;  %v248_v54 = vmul.f32 2.0, %v217_v42  ;;  %v305_v8 = vsel %vm274_vm1, %v1320_v5, inf }
  0xe6   :  { %v1090_v45 = vpop.f32.mrf.mxu0 }
  0xe7   :  { %v251_v46 = vmul.f32 2.0, %v1090_v45  ;;  %v314_v47 = vsel %vm274_vm1, %v1282_v43, inf  ;;  %v1310_v63 = vsub.f32 %v1269_v25, %v248_v54 }
  0xe8   :  { %315 = vmin.xlane.f32.xlu0 %v314_v47  ;;  %v227_v49 = vpop.f32.mrf.mxu0 }
  0xe9   :  { %v250_v50 = vmul.f32 2.0, %v227_v49  ;;  %v1290_v51 = vsub.f32 %v1269_v25, %v251_v46  ;;  %v311_v4 = vsel %vm274_vm1, %v1310_v63, inf }
  0xeb   :  { %v1296_v55 = vsub.f32 %v1269_v25, %v250_v50  ;;  %v320_v57 = vsel %vm274_vm1, %v1290_v51, inf }
  0xec   :  { %309 = vmin.xlane.f32.xlu0 %v308_v56  ;;  %321 = vmin.xlane.f32.xlu1 %v320_v57 }
  0xed   :  { %v317_v62 = vsel %vm274_vm1, %v1296_v55, inf }
  0xf0   :  { %303 = vmin.xlane.f32.xlu0 %v302_v61  ;;  %318 = vmin.xlane.f32.xlu1 %v317_v62 }
  0xf4   :  { %297 = vmin.xlane.f32.xlu0 %v296_v3  ;;  %312 = vmin.xlane.f32.xlu1 %v311_v4 }
  0xf8   :  { %285 = vmin.xlane.f32.xlu0 %v284_v7  ;;  %306 = vmin.xlane.f32.xlu1 %v305_v8 }
  0xfc   :  { %288 = vmin.xlane.f32.xlu0 %v287_v12  ;;  %300 = vmin.xlane.f32.xlu1 %v299_v13 }
 0x100   :  { %282 = vmin.xlane.f32.xlu1 %v281_v16 }
 0x104   :  { %294 = vmin.xlane.f32.xlu1 %v293_v18 }
 0x108   :  { %291 = vmin.xlane.f32.xlu1 %v290_v20 }
 0x15b   :  { %v277_v23 = vpop.xlane.xlu0 %276 }
 0x15c   :  { %vm325_vm2 = vcmp.le.f32.partialorder %v1272_v26, %v277_v23 }
 0x15d   :  { %v341_v24 = vsel %vm325_vm2, %v1351_v22, 16 }
 0x15e   :  { %v1356_v27 = vsel %vm274_vm1, %v341_v24, 2147483647 }
 0x15f   :  { %v280_v28 = vpop.xlane.xlu0 %279  ;;  %v359_v25 = vshra.s32 %v1356_v27, 16 }
 0x160   :  { %vm326_vm3 = vcmp.le.f32.partialorder %v1277_v29, %v280_v28 }
 0x161   :  { %v342_v30 = vsel %vm326_vm3, %v1351_v22, 16  ;;  %v1361_v31 = vcvt.s32.f32 %v359_v25 }
 0x162   :  { %v1364_v32 = vsel %vm274_vm1, %v342_v30, 2147483647 }
 0x163   :  { %362 = vmin.xlane.f32.xlu0 %v1361_v31  ;;  %v374_v26 = vshra.s32 %v1364_v32, 16 }
 0x165   :  { %v1368_v33 = vcvt.s32.f32 %v374_v26 }
 0x167   :  { %377 = vmin.xlane.f32.xlu1 %v1368_v33 }
 0x171   :  { %v316_v34 = vpop.xlane.xlu0 %315 }
 0x172   :  { %vm338_vm4 = vcmp.le.f32.partialorder %v1282_v43, %v316_v34 }
 0x173   :  { %v354_v29 = vsel %vm338_vm4, %v1351_v22, 16 }
 0x174   :  { %v1377_v38 = vsel %vm274_vm1, %v354_v29, 2147483647 }
 0x175   :  { %v310_v35 = vpop.xlane.xlu0 %309  ;;  %v322_v36 = vpop.xlane.xlu1 %321  ;;  %v554_v46 = vshra.s32 %v1377_v38, 16 }
 0x176   :  { %vm336_vm5 = vcmp.le.f32.partialorder %v1287_v48, %v310_v35  ;;  %vm340_vm6 = vcmp.le.f32.partialorder %v1290_v51, %v322_v36 }
 0x177   :  { %v356_v37 = vsel %vm340_vm6, %v1351_v22, 16  ;;  %v352_v40 = vsel %vm336_vm5, %v1351_v22, 16  ;;  %v1402_v54 = vcvt.s32.f32 %v554_v46 }
 0x178   :  { %v1380_v39 = vsel %vm274_vm1, %v356_v37, 2147483647  ;;  %v1391_v47 = vsel %vm274_vm1, %v352_v40, 2147483647 }
 0x179   :  { %v304_v41 = vpop.xlane.xlu0 %303  ;;  %v319_v42 = vpop.xlane.xlu1 %318  ;;  %v584_v43 = vshra.s32 %v1380_v39, 16  ;;  %v524_v56 = vshra.s32 %v1391_v47, 16 }
 0x17a   :  { %vm334_vm7 = vcmp.le.f32.partialorder %v1293_v53, %v304_v41  ;;  %vm339_vm8 = vcmp.le.f32.partialorder %v1296_v55, %v319_v42 }
 0x17b   :  { %v355_v44 = vsel %vm339_vm8, %v1351_v22, 16  ;;  %v1387_v45 = vcvt.s32.f32 %v584_v43  ;;  %v350_v49 = vsel %vm334_vm7, %v1351_v22, 16  ;;  %v1420_v0 = vcvt.s32.f32 %v524_v56 }
 0x17c   :  { %v1394_v48 = vsel %vm274_vm1, %v355_v44, 2147483647  ;;  %v1408_v57 = vsel %vm274_vm1, %v350_v49, 2147483647 }
 0x17d   :  { %v298_v50 = vpop.xlane.xlu0 %297  ;;  %587 = vmin.xlane.f32.xlu0 %v1387_v45  ;;  %v313_v51 = vpop.xlane.xlu1 %312  ;;  %v569_v52 = vshra.s32 %v1394_v48, 16  ;;  %v494_v3 = vshra.s32 %v1408_v57, 16 }
 0x17e   :  { %vm332_vm9 = vcmp.le.f32.partialorder %v1303_v59, %v298_v50  ;;  %vm337_vm10 = vcmp.le.f32.partialorder %v1310_v63, %v313_v51 }
 0x17f   :  { %v353_v53 = vsel %vm337_vm10, %v1351_v22, 16  ;;  %v1404_v55 = vcvt.s32.f32 %v569_v52  ;;  %v348_v60 = vsel %vm332_vm9, %v1351_v22, 16  ;;  %v1438_v12 = vcvt.s32.f32 %v494_v3 }
 0x180   :  { %v1411_v58 = vsel %vm274_vm1, %v353_v53, 2147483647  ;;  %v1426_v4 = vsel %vm274_vm1, %v348_v60, 2147483647  ;;  %v373_v52 = vand.u32 65535, %v1364_v32  ;;  %v39_v32 = vld [vmem:[%s1780_s2] sm:$0xff] }
 0x181   :  { %v286_v61 = vpop.xlane.xlu0 %285  ;;  %557 = vmin.xlane.f32.xlu0 %v1402_v54  ;;  %572 = vmin.xlane.f32.xlu1 %v1404_v55  ;;  %v307_v59 = vpop.xlane.xlu1 %306  ;;  %v539_v62 = vshra.s32 %v1411_v58, 16  ;;  %v464_v15 = vshra.s32 %v1426_v4, 16  ;;  %v568_v3 = vand.u32 65535, %v1394_v48 }
 0x182   :  { %vm328_vm11 = vcmp.le.f32.partialorder %v1313_v1, %v286_v61  ;;  %vm335_vm12 = vcmp.le.f32.partialorder %v1320_v5, %v307_v59  ;;  %v375_v60 = vcvt.s32.f32 %v373_v52  ;;  %v1158_v59 = vmov 0.0  }
 0x183   :  { %v351_v63 = vsel %vm335_vm12, %v1351_v22, 16  ;;  %v1422_v2 = vcvt.s32.f32 %v539_v62  ;;  %v344_v7 = vsel %vm328_vm11, %v1351_v22, 16  ;;  %v1455_v23 = vcvt.s32.f32 %v464_v15 }
 0x184   :  { %v1429_v6 = vsel %vm274_vm1, %v351_v63, 2147483647  ;;  %v1444_v16 = vsel %vm274_vm1, %v344_v7, 2147483647  ;;  %v553_v63 = vand.u32 65535, %v1377_v38  ;;  %v538_v15 = vand.u32 65535, %v1411_v58 }
 0x185   :  { %v289_v8 = vpop.xlane.xlu0 %288  ;;  %527 = vmin.xlane.f32.xlu0 %v1420_v0  ;;  %542 = vmin.xlane.f32.xlu1 %v1422_v2  ;;  %v301_v1 = vpop.xlane.xlu1 %300  ;;  %v509_v5 = vshra.s32 %v1429_v6, 16  ;;  %v404_v28 = vshra.s32 %v1444_v16, 16  ;;  %v508_v58 = vand.u32 65535, %v1429_v6 }
 0x186   :  { %vm329_vm13 = vcmp.le.f32.partialorder %v1327_v9, %v289_v8  ;;  %vm333_vm14 = vcmp.le.f32.partialorder %v1330_v10, %v301_v1  ;;  %v555_v1 = vcvt.s32.f32 %v553_v63 }
 0x187   :  { %v349_v11 = vsel %vm333_vm14, %v1351_v22, 16  ;;  %v1440_v13 = vcvt.s32.f32 %v509_v5  ;;  %v345_v20 = vsel %vm329_vm13, %v1351_v22, 16  ;;  %v1471_v29 = vcvt.s32.f32 %v404_v28 }
 0x188   :  { %v1447_v18 = vsel %vm274_vm1, %v349_v11, 2147483647  ;;  %v1461_v25 = vsel %vm274_vm1, %v345_v20, 2147483647  ;;  %v570_v5 = vcvt.s32.f32 %v568_v3  ;;  %v523_v11 = vand.u32 65535, %v1391_v47 }
 0x189   :  { %497 = vmin.xlane.f32.xlu0 %v1438_v12  ;;  %512 = vmin.xlane.f32.xlu1 %v1440_v13  ;;  %v283_v9 = vpop.xlane.xlu1 %282  ;;  %v479_v10 = vshra.s32 %v1447_v18, 16  ;;  %v419_v36 = vshra.s32 %v1461_v25, 16  ;;  %v493_v47 = vand.u32 65535, %v1408_v57  ;;  %v463_v57 = vand.u32 65535, %v1426_v4 }
 0x18a   :  { %vm327_vm15 = vcmp.le.f32.partialorder %v1337_v14, %v283_v9  ;;  %v525_v9 = vcvt.s32.f32 %v523_v11  ;;  %v478_v6 = vand.u32 65535, %v1447_v18  ;;  %v403_v4 = vand.u32 65535, %v1444_v16 }
 0x18b   :  { %v343_v21 = vsel %vm327_vm15, %v1351_v22, 16  ;;  %v1457_v24 = vcvt.s32.f32 %v479_v10  ;;  %v1484_v42 = vcvt.s32.f32 %v419_v36  ;;  %v540_v10 = vcvt.s32.f32 %v538_v15 }
 0x18c   :  { %v1464_v30 = vsel %vm274_vm1, %v343_v21, 2147483647  ;;  %v418_v16 = vand.u32 65535, %v1461_v25 }
 0x18d   :  { %467 = vmin.xlane.f32.xlu0 %v1455_v23  ;;  %482 = vmin.xlane.f32.xlu1 %v1457_v24  ;;  %v295_v26 = vpop.xlane.xlu1 %294  ;;  %v389_v14 = vshra.s32 %v1464_v30, 16  ;;  %v388_v18 = vand.u32 65535, %v1464_v30 }
 0x18e   :  { %vm331_vm2 = vcmp.le.f32.partialorder %v1342_v17, %v295_v26  ;;  %v495_v26 = vcvt.s32.f32 %v493_v47 }
 0x18f   :  { %v347_v34 = vsel %vm331_vm2, %v1351_v22, 16  ;;  %v1473_v35 = vcvt.s32.f32 %v389_v14  ;;  %v510_v14 = vcvt.s32.f32 %v508_v58 }
 0x190   :  { %v1477_v37 = vsel %vm274_vm1, %v347_v34, 2147483647 }
 0x191   :  { %407 = vmin.xlane.f32.xlu0 %v1471_v29  ;;  %392 = vmin.xlane.f32.xlu1 %v1473_v35  ;;  %v292_v40 = vpop.xlane.xlu1 %291  ;;  %v449_v41 = vshra.s32 %v1477_v37, 16  ;;  %v448_v30 = vand.u32 65535, %v1477_v37 }
 0x192   :  { %vm330_vm3 = vcmp.le.f32.partialorder %v1347_v19, %v292_v40  ;;  %v358_v19 = vand.u32 65535, %v1356_v27  ;;  %v40_v27 = vld [vmem:[%s1780_s2 + $0x8] sm:$0xff]  ;;  %v465_v40 = vcvt.s32.f32 %v463_v57 }
 0x193   :  { %v346_v17 = vsel %vm330_vm3, %v1351_v22, 16  ;;  %v1486_v43 = vcvt.s32.f32 %v449_v41  ;;  %1091 = vmatprep.subr.mxu1 %v40_v27  ;;  %v480_v41 = vcvt.s32.f32 %v478_v6 }
 0x194   :  { %v1489_v44 = vsel %vm274_vm1, %v346_v17, 2147483647  ;;  %v360_v51 = vcvt.s32.f32 %v358_v19  ;;  %1092 = vmatpush3.msra.mxu1 %v40_v27  ;;  %v405_v19 = vcvt.s32.f32 %v403_v4 }
 0x195   :  { %422 = vmin.xlane.f32.xlu0 %v1484_v42  ;;  %452 = vmin.xlane.f32.xlu1 %v1486_v43  ;;  %v434_v46 = vshra.s32 %v1489_v44, 16  ;;  %v433_v25 = vand.u32 65535, %v1489_v44 }
 0x196   :  { %1093 = vmatprep.subr.mxu1 %v39_v32 }
 0x197   :  { %v1494_v49 = vcvt.s32.f32 %v434_v46  ;;  %1094 = vmatpush3.msra.mxu1 %v39_v32  ;;  %v435_v27 = vcvt.s32.f32 %v433_v25 }
 0x198   :  { %1119 = vmatprep.subr.mxu1 %v1158_v59 }
 0x199   :  { %437 = vmin.xlane.f32.xlu1 %v1494_v49 }
 0x1ec   :  { %v1498_v50 = vpop.xlane.xlu0 %362 }
 0x1ed   :  { %vm364_vm4 = vcmp.eq.f32.partialorder %v1361_v31, %v1498_v50  ;;  %v583_v31 = vand.u32 65535, %v1380_v39  ;;  %v369_v44 = vcvt.f32.s32 %v1498_v50 }
 0x1ee   :  { %v365_v53 = vsel %vm364_vm4, %v360_v51, inf  ;;  %v390_v51 = vcvt.s32.f32 %v388_v18 }
 0x1ef   :  { %366 = vmin.xlane.f32.xlu0 %v365_v53  ;;  %v585_v62 = vcvt.s32.f32 %v583_v31 }
 0x1f0   :  { %v1503_v56 = vpop.xlane.xlu1 %377 }
 0x1f1   :  { %vm379_vm5 = vcmp.eq.f32.partialorder %v1368_v33, %v1503_v56 }
 0x1f2   :  { %v380_v61 = vsel %vm379_vm5, %v375_v60, inf  ;;  %v420_v60 = vcvt.s32.f32 %v418_v16 }
 0x1f3   :  { %381 = vmin.xlane.f32.xlu1 %v380_v61  ;;  %v450_v61 = vcvt.s32.f32 %v448_v30 }
 0x206   :  { %v1515_v33 = vpop.xlane.xlu0 %587 }
 0x207   :  { %vm589_vm6 = vcmp.eq.f32.partialorder %v1387_v45, %v1515_v33  ;;  %v594_v50 = vcvt.f32.s32 %v1515_v33 }
 0x208   :  { %v590_v7 = vsel %vm589_vm6, %v585_v62, inf  ;;  %v370_v62 = vshll.u32 %v369_v44, 16 }
 0x209   :  { %591 = vmin.xlane.f32.xlu0 %v590_v7 }
 0x20a   :  { %v1521_v8 = vpop.xlane.xlu0 %557  ;;  %v1523_v39 = vpop.xlane.xlu1 %572 }
 0x20b   :  { %vm559_vm7 = vcmp.eq.f32.partialorder %v1402_v54, %v1521_v8  ;;  %vm574_vm8 = vcmp.eq.f32.partialorder %v1404_v55, %v1523_v39  ;;  %v579_v15 = vcvt.f32.s32 %v1523_v39 }
 0x20c   :  { %v560_v38 = vsel %vm559_vm7, %v555_v1, inf  ;;  %v575_v45 = vsel %vm574_vm8, %v570_v5, inf }
 0x20d   :  { %561 = vmin.xlane.f32.xlu0 %v560_v38  ;;  %576 = vmin.xlane.f32.xlu1 %v575_v45  ;;  %v595_v45 = vshll.u32 %v594_v50, 16  ;;  %v580_v58 = vshll.u32 %v579_v15, 16 }
 0x20e   :  { %v1531_v48 = vpop.xlane.xlu0 %527  ;;  %v1533_v20 = vpop.xlane.xlu1 %542 }
 0x20f   :  { %vm529_vm9 = vcmp.eq.f32.partialorder %v1420_v0, %v1531_v48  ;;  %vm544_vm10 = vcmp.eq.f32.partialorder %v1422_v2, %v1533_v20 }
 0x210   :  { %v530_v54 = vsel %vm529_vm9, %v525_v9, inf  ;;  %v545_v55 = vsel %vm544_vm10, %v540_v10, inf }
 0x211   :  { %531 = vmin.xlane.f32.xlu0 %v530_v54  ;;  %546 = vmin.xlane.f32.xlu1 %v545_v55 }
 0x212   :  { %v1541_v21 = vpop.xlane.xlu0 %497  ;;  %v1543_v28 = vpop.xlane.xlu1 %512 }
 0x213   :  { %vm499_vm11 = vcmp.eq.f32.partialorder %v1438_v12, %v1541_v21  ;;  %vm514_vm12 = vcmp.eq.f32.partialorder %v1440_v13, %v1543_v28 }
 0x214   :  { %v500_v0 = vsel %vm499_vm11, %v495_v26, inf  ;;  %v515_v2 = vsel %vm514_vm12, %v510_v14, inf  ;;  %v549_v26 = vcvt.f32.s32 %v1533_v20 }
 0x215   :  { %501 = vmin.xlane.f32.xlu0 %v500_v0  ;;  %516 = vmin.xlane.f32.xlu1 %v515_v2  ;;  %v534_v2 = vcvt.f32.s32 %v1531_v48  ;;  %v519_v48 = vcvt.f32.s32 %v1543_v28 }
 0x216   :  { %v1551_v34 = vpop.xlane.xlu0 %467  ;;  %v1553_v36 = vpop.xlane.xlu1 %482 }
 0x217   :  { %vm469_vm13 = vcmp.eq.f32.partialorder %v1455_v23, %v1551_v34  ;;  %vm484_vm14 = vcmp.eq.f32.partialorder %v1457_v24, %v1553_v36 }
 0x218   :  { %v470_v12 = vsel %vm469_vm13, %v465_v40, inf  ;;  %v485_v13 = vsel %vm484_vm14, %v480_v41, inf  ;;  %v550_v40 = vshll.u32 %v549_v26, 16 }
 0x219   :  { %471 = vmin.xlane.f32.xlu0 %v470_v12  ;;  %486 = vmin.xlane.f32.xlu1 %v485_v13 }
 0x21a   :  { %v1561_v17 = vpop.xlane.xlu0 %407  ;;  %v1563_v46 = vpop.xlane.xlu1 %392 }
 0x21b   :  { %vm409_vm15 = vcmp.eq.f32.partialorder %v1471_v29, %v1561_v17  ;;  %vm394_vm2 = vcmp.eq.f32.partialorder %v1473_v35, %v1563_v46  ;;  %v414_v25 = vcvt.f32.s32 %v1561_v17  ;;  %v399_v28 = vcvt.f32.s32 %v1563_v46 }
 0x21c   :  { %v410_v23 = vsel %vm409_vm15, %v405_v19, inf  ;;  %v395_v24 = vsel %vm394_vm2, %v390_v51, inf  ;;  %v535_v19 = vshll.u32 %v534_v2, 16 }
 0x21d   :  { %411 = vmin.xlane.f32.xlu0 %v410_v23  ;;  %396 = vmin.xlane.f32.xlu1 %v395_v24  ;;  %v504_v23 = vcvt.f32.s32 %v1541_v21  ;;  %v415_v17 = vshll.u32 %v414_v25, 16  ;;  %v400_v46 = vshll.u32 %v399_v28, 16 }
 0x21e   :  { %v1571_v52 = vpop.xlane.xlu0 %422  ;;  %v1573_v53 = vpop.xlane.xlu1 %452 }
 0x21f   :  { %vm424_vm3 = vcmp.eq.f32.partialorder %v1484_v42, %v1571_v52  ;;  %vm454_vm4 = vcmp.eq.f32.partialorder %v1486_v43, %v1573_v53  ;;  %v384_v42 = vcvt.f32.s32 %v1503_v56  ;;  %v564_v56 = vcvt.f32.s32 %v1521_v8 }
 0x220   :  { %v425_v29 = vsel %vm424_vm3, %v420_v60, inf  ;;  %v455_v35 = vsel %vm454_vm4, %v450_v61, inf  ;;  %v520_v61 = vshll.u32 %v519_v48, 16  ;;  %v505_v21 = vshll.u32 %v504_v23, 16 }
 0x221   :  { %426 = vmin.xlane.f32.xlu0 %v425_v29  ;;  %456 = vmin.xlane.f32.xlu1 %v455_v35  ;;  %v385_v7 = vshll.u32 %v384_v42, 16  ;;  %v565_v47 = vshll.u32 %v564_v56, 16  ;;  %v429_v44 = vcvt.f32.s32 %v1571_v52 }
 0x222   :  { %v1580_v37 = vpop.xlane.xlu1 %437 }
 0x223   :  { %vm439_vm5 = vcmp.eq.f32.partialorder %v1494_v49, %v1580_v37  ;;  %v430_v50 = vshll.u32 %v429_v44, 16  ;;  %v444_v56 = vcvt.f32.s32 %v1580_v37 }
 0x224   :  { %v440_v32 = vsel %vm439_vm5, %v435_v27, inf }
 0x225   :  { %441 = vmin.xlane.f32.xlu1 %v440_v32  ;;  %v489_v32 = vcvt.f32.s32 %v1553_v36 }
 0x278   :  { %v367_v31 = vpop.xlane.xlu0 %366 }
 0x279   :  { %v368_v63 = vcvt.f32.s32 %v367_v31 }
 0x27b   :  { %v371_v43 = vadd.s32 %v370_v62, %v368_v63 }
 0x27c   :  { %v382_v3 = vpop.xlane.xlu1 %381 }
 0x27d   :  { %v383_v1 = vcvt.f32.s32 %v382_v3  ;;  %vm597_vm6 = vcmp.eq.s32.totalorder %v1351_v22, %v371_v43  ;;  %v474_v43 = vcvt.f32.s32 %v1551_v34  ;;  %v459_v3 = vcvt.f32.s32 %v1573_v53 }
 0x27e   :  { %v1588_v5 = vsel %vm597_vm6, 1.0, %v1158_v59 }
 0x27f   :  { %v386_v11 = vadd.s32 %v385_v7, %v383_v1  ;;  %1095 = vmatprep.mubr.msk.f32.mxu1 %vm274_vm1, %v1588_v5 }
 0x281   :  { %vm598_vm7 = vcmp.eq.s32.totalorder %v1351_v22, %v386_v11  ;;  %v490_v11 = vshll.u32 %v489_v32, 16 }
 0x282   :  { %v1594_v49 = vsel %vm598_vm7, 1.0, %v1158_v59 }
 0x283   :  { %1096 = vmatmul.mubr.msk.f32.vlgmr.msra.gmra.mxu1 %vm274_vm1, %v1594_v49 }
 0x292   :  { %v592_v38 = vpop.xlane.xlu0 %591 }
 0x293   :  { %v593_v9 = vcvt.f32.s32 %v592_v38 }
 0x295   :  { %v596_v10 = vadd.s32 %v595_v45, %v593_v9  ;;  %v460_v9 = vshll.u32 %v459_v3, 16 }
 0x296   :  { %v562_v54 = vpop.xlane.xlu0 %561  ;;  %v577_v55 = vpop.xlane.xlu1 %576 }
 0x297   :  { %vm612_vm8 = vcmp.eq.s32.totalorder %v1351_v22, %v596_v10  ;;  %v563_v14 = vcvt.f32.s32 %v562_v54  ;;  %v578_v57 = vcvt.f32.s32 %v577_v55 }
 0x298   :  { %v1604_v33 = vsel %vm612_vm8, 1.0, %v1158_v59  ;;  %vm1159_vm8 = vmmov 0  }
 0x299   :  { %v566_v8 = vadd.s32 %v565_v47, %v563_v14  ;;  %v581_v6 = vadd.s32 %v580_v58, %v578_v57  ;;  %1120 = vmatpush3.xpose.msk.msra.mxu1 %vm274_vm1, %v1604_v33  ;;  %v475_v57 = vshll.u32 %v474_v43, 16 }
 0x29a   :  { %v532_v39 = vpop.xlane.xlu0 %531  ;;  %v547_v0 = vpop.xlane.xlu1 %546  ;;  %1121 = vmatprep.subr.mxu1 %v1158_v59 }
 0x29b   :  { %vm611_vm9 = vcmp.eq.s32.totalorder %v1351_v22, %v581_v6  ;;  %v548_v20 = vcvt.f32.s32 %v547_v0  ;;  %vm610_vm10 = vcmp.eq.s32.totalorder %v1351_v22, %v566_v8  ;;  %v533_v4 = vcvt.f32.s32 %v532_v39 }
 0x29c   :  { %v1612_v41 = vsel %vm611_vm9, 1.0, %v1158_v59  ;;  %v1620_v51 = vsel %vm610_vm10, 1.0, %v1158_v59  ;;  %v445_v8 = vshll.u32 %v444_v56, 16 }
 0x29d   :  { %v551_v18 = vadd.s32 %v550_v40, %v548_v20  ;;  %1122 = vmatpush3.xpose.msk.msra.mxu1 %vm274_vm1, %v1612_v41  ;;  %v536_v16 = vadd.s32 %v535_v19, %v533_v4 }
 0x29e   :  { %v502_v12 = vpop.xlane.xlu0 %501  ;;  %v517_v13 = vpop.xlane.xlu1 %516  ;;  %1123 = vmatprep.subr.mxu1 %v1158_v59 }
 0x29f   :  { %vm609_vm11 = vcmp.eq.s32.totalorder %v1351_v22, %v551_v18  ;;  %v518_v30 = vcvt.f32.s32 %v517_v13  ;;  %vm608_vm12 = vcmp.eq.s32.totalorder %v1351_v22, %v536_v16  ;;  %v503_v35 = vcvt.f32.s32 %v502_v12 }
 0x2a0   :  { %v1630_v29 = vsel %vm609_vm11, 1.0, %v1158_v59  ;;  %v966_v7 = vsel %vm608_vm12, 1.0, %v1158_v59 }
 0x2a1   :  { %1124 = vmatpush3.xpose.msk.msra.mxu1 %vm274_vm1, %v1620_v51  ;;  %v521_v27 = vadd.s32 %v520_v61, %v518_v30  ;;  %v506_v1 = vadd.s32 %v505_v21, %v503_v35 }
 0x2a2   :  { %v472_v24 = vpop.xlane.xlu0 %471  ;;  %v487_v60 = vpop.xlane.xlu1 %486  ;;  %1125 = vmatprep.subr.mxu1 %v1158_v59 }
 0x2a3   :  { %vm607_vm13 = vcmp.eq.s32.totalorder %v1351_v22, %v521_v27  ;;  %v488_v15 = vcvt.f32.s32 %v487_v60  ;;  %vm606_vm2 = vcmp.eq.s32.totalorder %v1351_v22, %v506_v1  ;;  %v473_v58 = vcvt.f32.s32 %v472_v24 }
 0x2a4   :  { %v965_v10 = vsel %vm607_vm13, 1.0, %v1158_v59  ;;  %v964_v39 = vsel %vm606_vm2, 1.0, %v1158_v59 }
 0x2a5   :  { %1126 = vmatpush3.xpose.msk.msra.mxu1 %vm274_vm1, %v1630_v29  ;;  %v491_v55 = vadd.s32 %v490_v11, %v488_v15  ;;  %v476_v2 = vadd.s32 %v475_v57, %v473_v58 }
 0x2a6   :  { %v412_v31 = vpop.xlane.xlu0 %411  ;;  %v397_v62 = vpop.xlane.xlu1 %396  ;;  %1127 = vmatprep.subr.mxu1 %v1158_v59 }
 0x2a7   :  { %v413_v42 = vcvt.f32.s32 %v412_v31  ;;  %v398_v63 = vcvt.f32.s32 %v397_v62  ;;  %vm605_vm4 = vcmp.eq.s32.totalorder %v1351_v22, %v491_v55  ;;  %vm604_vm7 = vcmp.eq.s32.totalorder %v1351_v22, %v476_v2 }
 0x2a8   :  { %v963_v4 = vsel %vm605_vm4, 1.0, %v1158_v59  ;;  %v962_v12 = vsel %vm604_vm7, 1.0, %v1158_v59 }
 0x2a9   :  { %v416_v36 = vadd.s32 %v415_v17, %v413_v42  ;;  %v401_v52 = vadd.s32 %v400_v46, %v398_v63  ;;  %1128 = vmatpush3.xpose.msk.msra.mxu1 %vm274_vm1, %v966_v7 }
 0x2aa   :  { %v427_v38 = vpop.xlane.xlu0 %426  ;;  %v457_v34 = vpop.xlane.xlu1 %456  ;;  %1129 = vmatprep.subr.mxu1 %v1158_v59 }
 0x2ab   :  { %v428_v53 = vcvt.f32.s32 %v427_v38  ;;  %v458_v45 = vcvt.f32.s32 %v457_v34  ;;  %vm599_vm14 = vcmp.eq.s32.totalorder %v1351_v22, %v401_v52  ;;  %vm600_vm15 = vcmp.eq.s32.totalorder %v1351_v22, %v416_v36 }
 0x2ac   :  { %v957_v47 = vsel %vm599_vm14, 1.0, %v1158_v59  ;;  %v958_v37 = vsel %vm600_vm15, 1.0, %v1158_v59 }
 0x2ad   :  { %v431_v54 = vadd.s32 %v430_v50, %v428_v53  ;;  %1098 = vmatprep.mubr.msk.f32.mxu1 %vm274_vm1, %v957_v47  ;;  %1130 = vmatpush3.xpose.msk.msra.mxu1 %vm274_vm1, %v965_v10  ;;  %v461_v26 = vadd.s32 %v460_v9, %v458_v45 }
 0x2ae   :  { %1099 = vmatmul.mubr.msk.f32.gmra.mxu1 %vm274_vm1, %v958_v37  ;;  %v442_v14 = vpop.xlane.xlu1 %441  ;;  %1131 = vmatprep.subr.mxu1 %v1158_v59 }
 0x2af   :  { %vm601_vm3 = vcmp.eq.s32.totalorder %v1351_v22, %v431_v54  ;;  %v443_v6 = vcvt.f32.s32 %v442_v14  ;;  %vm603_vm5 = vcmp.eq.s32.totalorder %v1351_v22, %v461_v26 }
 0x2b0   :  { %v959_v0 = vsel %vm601_vm3, 1.0, %v1158_v59  ;;  %v961_v18 = vsel %vm603_vm5, 1.0, %v1158_v59 }
 0x2b1   :  { %v446_v40 = vadd.s32 %v445_v8, %v443_v6  ;;  %1101 = vmatprep.mubr.msk.f32.mxu1 %vm274_vm1, %v959_v0  ;;  %1132 = vmatpush3.xpose.msk.msra.mxu1 %vm274_vm1, %v964_v39 }
 0x2b2   :  { %1133 = vmatprep.subr.mxu1 %v1158_v59 }
 0x2b3   :  { %vm602_vm6 = vcmp.eq.s32.totalorder %v1351_v22, %v446_v40 }
 0x2b4   :  { %v960_v20 = vsel %vm602_vm6, 1.0, %v1158_v59 }
 0x2b5   :  { %1102 = vmatmul.mubr.msk.f32.gmra.mxu1 %vm274_vm1, %v960_v20 }
 0x2b6   :  { %1134 = vmatpush3.xpose.msk.msra.mxu1 %vm274_vm1, %v963_v4  ;;  %1104 = vmatprep.mubr.msk.f32.mxu1 %vm274_vm1, %v961_v18 }
 0x2b7   :  { %1135 = vmatprep.subr.mxu1 %v1158_v59 }
 0x2b9   :  { %1105 = vmatmul.mubr.msk.f32.gmra.mxu1 %vm274_vm1, %v962_v12 }
 0x2ba   :  { %1136 = vmatpush3.xpose.msk.msra.mxu1 %vm274_vm1, %v962_v12  ;;  %1107 = vmatprep.mubr.msk.f32.mxu1 %vm274_vm1, %v963_v4 }
 0x2bb   :  { %1137 = vmatprep.subr.mxu1 %v1158_v59 }
 0x2bd   :  { %1108 = vmatmul.mubr.msk.f32.gmra.mxu1 %vm274_vm1, %v964_v39 }
 0x2be   :  { %1138 = vmatpush3.xpose.msk.msra.mxu1 %vm274_vm1, %v961_v18  ;;  %1110 = vmatprep.mubr.msk.f32.mxu1 %vm274_vm1, %v965_v10 }
 0x2bf   :  { %1139 = vmatprep.subr.mxu1 %v1158_v59 }
 0x2c1   :  { %1111 = vmatmul.mubr.msk.f32.gmra.mxu1 %vm274_vm1, %v966_v7 }
 0x2c2   :  { %1140 = vmatpush3.xpose.msk.msra.mxu1 %vm274_vm1, %v960_v20  ;;  %1113 = vmatprep.mubr.msk.f32.mxu1 %vm274_vm1, %v1630_v29 }
 0x2c3   :  { %1141 = vmatprep.subr.mxu1 %v1158_v59 }
 0x2c5   :  { %1114 = vmatmul.mubr.msk.f32.gmra.mxu1 %vm274_vm1, %v1620_v51 }
 0x2c6   :  { %1142 = vmatpush3.xpose.msk.msra.mxu1 %vm274_vm1, %v959_v0  ;;  %1116 = vmatprep.mubr.msk.f32.mxu1 %vm274_vm1, %v1612_v41  ;;  %v854_v41 = vcvt.s32.f32 %v1351_v22 }
 0x2c7   :  { %1143 = vmatprep.subr.mxu1 %v1158_v59 }
 0x2c9   :  { %1117 = vmatmul.mubr.msk.f32.gmra.mxu1 %vm274_vm1, %v1604_v33 }
 0x2ca   :  { %1144 = vmatpush3.xpose.msk.msra.mxu1 %vm274_vm1, %v958_v37  ;;  %1151 = vmatprep.mubr.msk.f32.mxu1 %vm1159_vm8, %v1158_v59 }
 0x2cb   :  { %1145 = vmatprep.subr.mxu1 %v1158_v59 }
 0x2ce   :  { %1146 = vmatpush3.xpose.msk.msra.mxu1 %vm274_vm1, %v957_v47 }
 0x2cf   :  { %1147 = vmatprep.subr.mxu1 %v1158_v59 }
 0x2d2   :  { %1148 = vmatpush3.xpose.msk.msra.mxu1 %vm274_vm1, %v1594_v49 }
 0x2d3   :  { %1149 = vmatprep.subr.mxu1 %v1158_v59 }
 0x2d6   :  { %1150 = vmatpush3.xpose.msk.msra.mxu1 %vm274_vm1, %v1588_v5 }
 0x2d9   :  { %1152 = vmatmul.mubr.msk.f32.vlgmr.msra.gmra.mxu1 %vm274_vm1, %v854_v41 }
 0x343   :  { %v1097_v33 = vpop.f32.mrf.mxu1 }
 0x344   :  { %839 = vst.msk [vmem:[%s1781_s4 + $0x8] sm:$0xff] %vm42_vm0, %v1097_v33 }
 0x345   :  { %v759_v13 = vpop.f32.mrf.mxu1 }
 0x346   :  { %838 = vst.msk [vmem:[%s1781_s4] sm:$0xff] %vm42_vm0, %v759_v13 }
 0x36e   :  { %v1100_v59 = vpop.f32.mrf.mxu1 }
 0x36f   :  { %841 = vst.msk [vmem:[%s1781_s4 + $0x18] sm:$0xff] %vm42_vm0, %v1100_v59 }
 0x370   :  { %v769_v22 = vpop.f32.mrf.mxu1 }
 0x371   :  { %840 = vst.msk [vmem:[%s1781_s4 + $0x10] sm:$0xff] %vm42_vm0, %v769_v22 }
 0x375   :  { %v1103_v5 = vpop.f32.mrf.mxu1 }
 0x376   :  { %843 = vst.msk [vmem:[%s1781_s4 + $0x28] sm:$0xff] %vm42_vm0, %v1103_v5 }
 0x377   :  { %v779_v49 = vpop.f32.mrf.mxu1 }
 0x378   :  { %842 = vst.msk [vmem:[%s1781_s4 + $0x20] sm:$0xff] %vm42_vm0, %v779_v49 }
 0x379   :  { %v1106_v19 = vpop.f32.mrf.mxu1 }
 0x37a   :  { %845 = vst.msk [vmem:[%s1781_s4 + $0x38] sm:$0xff] %vm42_vm0, %v1106_v19 }
 0x37b   :  { %v789_v48 = vpop.f32.mrf.mxu1 }
 0x37c   :  { %844 = vst.msk [vmem:[%s1781_s4 + $0x30] sm:$0xff] %vm42_vm0, %v789_v48 }
 0x37d   :  { %v1109_v51 = vpop.f32.mrf.mxu1 }
 0x37e   :  { %847 = vst.msk [vmem:[%s1781_s4 + $0x48] sm:$0xff] %vm42_vm0, %v1109_v51 }
 0x37f   :  { %v799_v16 = vpop.f32.mrf.mxu1 }
 0x380   :  { %846 = vst.msk [vmem:[%s1781_s4 + $0x40] sm:$0xff] %vm42_vm0, %v799_v16 }
 0x381   :  { %v1112_v30 = vpop.f32.mrf.mxu1 }
 0x382   :  { %849 = vst.msk [vmem:[%s1781_s4 + $0x58] sm:$0xff] %vm42_vm0, %v1112_v30 }
 0x383   :  { %v809_v23 = vpop.f32.mrf.mxu1 }
 0x384   :  { %848 = vst.msk [vmem:[%s1781_s4 + $0x50] sm:$0xff] %vm42_vm0, %v809_v23 }
 0x385   :  { %v1115_v24 = vpop.f32.mrf.mxu1 }
 0x386   :  { %851 = vst.msk [vmem:[%s1781_s4 + $0x68] sm:$0xff] %vm42_vm0, %v1115_v24 }
 0x387   :  { %v819_v60 = vpop.f32.mrf.mxu1 }
 0x388   :  { %850 = vst.msk [vmem:[%s1781_s4 + $0x60] sm:$0xff] %vm42_vm0, %v819_v60 }
 0x389   :  { %v1118_v61 = vpop.f32.mrf.mxu1 }
 0x38a   :  { %853 = vst.msk [vmem:[%s1781_s4 + $0x78] sm:$0xff] %vm42_vm0, %v1118_v61 }
 0x38b   :  { %v829_v25 = vpop.f32.mrf.mxu1 }
 0x38c   :  { %852 = vst.msk [vmem:[%s1781_s4 + $0x70] sm:$0xff] %vm42_vm0, %v829_v25 }
 0x399   :  { %v924_v28 = vpop.f32.mrf.mxu1 }
 0x39a   :  { %v1154_v29 = vtrunc.f32 %v924_v28 }
 0x39b   :  { %v1153_v35 = vpop.f32.mrf.mxu1 }
 0x39c   :  { %v1155_v27 = vcvt.f32.s32 %v1154_v29 }
 0x39e   :  { %929 = vst [vmem:[%s1782_s5] sm:$0x1] %v1155_v27 }

</bundles_post_ra>
